<compile_context>
chip_gen: v5e
topology: v5e:2x2
jax: 0.10.0
libtpu: 0.0.40
codegen_flags: <defaults>
</compile_context>

<pallas_src>
import jax
import jax.numpy as jnp
from jax.experimental import pallas as pl
from jax.experimental.pallas import tpu as pltpu

N_PAD = 8        # final layer width padded 1 -> 8: tiny, lane-legal output block
TB_LARGE = 256   # batch tile used only when B is large (fills v6e/v7x MXU M dim)


def mlp_kernel(x_ref, w1_ref, b1_ref, w2_ref, b2_ref, w3_ref, b3_ref, o_ref):
    # One (tb, F) batch tile: Linear(F,512) -> ReLU -> Linear(512,128) -> ReLU
    # -> Linear(128, N_PAD).  x arrives f32; the bf16 cast is fused here.
    x = x_ref[...].astype(jnp.bfloat16)
    h1 = jnp.dot(x, w1_ref[...], preferred_element_type=jnp.float32) + b1_ref[...]
    h1 = jnp.maximum(h1, 0.0).astype(jnp.bfloat16)                      # (tb, 512)
    h2 = jnp.dot(h1, w2_ref[...], preferred_element_type=jnp.float32) + b2_ref[...]
    h2 = jnp.maximum(h2, 0.0).astype(jnp.bfloat16)                      # (tb, 128)
    o_ref[...] = jnp.dot(h2, w3_ref[...], preferred_element_type=jnp.float32) + b3_ref[...]


def prepare_params(w1, b1, w2, b2, w3, b3):
    """One-time cast/pad of PyTorch-layout params ([in, out] weights)."""
    # Only the 1-wide final layer is padded (to N_PAD zero columns); padding is
    # zero-filled so column 0 of the output is exact.
    w3p = jnp.zeros((w3.shape[0], N_PAD), jnp.float32).at[:, : w3.shape[1]].set(w3)
    b3p = jnp.zeros((1, N_PAD), jnp.float32).at[:, : b3.shape[1]].set(b3)
    return (w1.astype(jnp.bfloat16), b1,
            w2.astype(jnp.bfloat16), b2,
            w3p.astype(jnp.bfloat16), b3p)


@jax.jit
def mlp_forward(x, w1, b1, w2, b2, w3p, b3p):
    B, F = x.shape
    h1_dim, h2_dim = w1.shape[1], w2.shape[1]

    # Adaptive batch tiling (shapes are static under jit):
    #   small B  -> single full-array tile rounded to the f32 sublane (8),
    #   large B  -> 256-row tiles (full MXU M on v6e/v7x, >=2 grid steps).
    if B >= 2 * TB_LARGE:
        tb = TB_LARGE
    else:
        tb = max(8, pl.cdiv(B, 8) * 8)
    b_pad = pl.cdiv(B, tb) * tb
    xp = x if b_pad == B else jnp.zeros((b_pad, F), x.dtype).at[:B].set(x)

    const = lambda shape: pl.BlockSpec(shape, lambda i: (0, 0))
    out_pad = pl.pallas_call(
        mlp_kernel,
        out_shape=jax.ShapeDtypeStruct((b_pad, N_PAD), jnp.float32),
        grid=(b_pad // tb,),
        in_specs=[
            pl.BlockSpec((tb, F), lambda i: (i, 0)),   # x tiled over batch (f32)
            const((F, h1_dim)),                        # weights/biases: VMEM-resident
            const((1, h1_dim)),
            const((h1_dim, h2_dim)),
            const((1, h2_dim)),
            const((h2_dim, N_PAD)),
            const((1, N_PAD)),
        ],
        out_specs=pl.BlockSpec((tb, N_PAD), lambda i: (i, 0)),
        compiler_params=pltpu.CompilerParams(
            dimension_semantics=("parallel",),   # batch tiles independent (megacore)
        ),
    )(xp, w1, b1, w2, b2, w3p, b3p)
    # Real prediction is column 0; drop batch padding (no-op when b_pad == B).
    return out_pad[:B, :1]


def init_linear(key, fan_in, fan_out):
    # PyTorch nn.Linear default init: U(-1/sqrt(fan_in), 1/sqrt(fan_in))
    kw, kb = jax.random.split(key)
    bound = 1.0 / jnp.sqrt(jnp.float32(fan_in))
    w = jax.random.uniform(kw, (fan_in, fan_out), jnp.float32, -bound, bound)
    b = jax.random.uniform(kb, (1, fan_out), jnp.float32, -bound, bound)
    return w, b


if __name__ == "__main__":
    key = jax.random.PRNGKey(0)
    k_x, k1, k2, k3 = jax.random.split(key, 4)

    batch = 8
    features = 64  # synthetic tabular feature count (Kaggle house-prices style)

    x = jax.random.normal(k_x, (batch, features), jnp.float32)
    w1, b1 = init_linear(k1, features, 512)
    w2, b2 = init_linear(k2, 512, 128)
    w3, b3 = init_linear(k3, 128, 1)

    # TODO(synk): training pieces (MSELoss, Adam w/ weight decay, log-RMSE metric)
    # are host-side utilities in the PyTorch module and are not part of forward().
    params = prepare_params(w1, b1, w2, b2, w3, b3)
    out = mlp_forward(x, *params)
    out = jax.block_until_ready(out)

    # Pure-JAX reference with matching bf16 matmul inputs / f32 accumulation.
    xb = x.astype(jnp.bfloat16)
    r1 = jnp.maximum(jnp.dot(xb, w1.astype(jnp.bfloat16),
                             preferred_element_type=jnp.float32) + b1, 0.0)
    r2 = jnp.maximum(jnp.dot(r1.astype(jnp.bfloat16), w2.astype(jnp.bfloat16),
                             preferred_element_type=jnp.float32) + b2, 0.0)
    ref = jnp.dot(r2.astype(jnp.bfloat16), w3.astype(jnp.bfloat16),
                  preferred_element_type=jnp.float32) + b3

    assert out.shape == (batch, 1)
    assert jnp.allclose(out, ref, atol=5e-3, rtol=5e-3), "mismatch vs reference"

    print("KERNEL_OK")
</pallas_src>

<mosaic_0001>
module attributes {stable_mosaic.version = 11 : i64} {
  func.func @mlp_kernel(%arg0: i32, %arg1: memref<8x64xf32, #tpu.memory_space<vmem>>, %arg2: memref<64x512xbf16, #tpu.memory_space<vmem>>, %arg3: memref<1x512xf32, #tpu.memory_space<vmem>>, %arg4: memref<512x128xbf16, #tpu.memory_space<vmem>>, %arg5: memref<1x128xf32, #tpu.memory_space<vmem>>, %arg6: memref<128x8xbf16, #tpu.memory_space<vmem>>, %arg7: memref<1x8xf32, #tpu.memory_space<vmem>>, %arg8: memref<8x8xf32, #tpu.memory_space<vmem>>) attributes {dimension_semantics = [#tpu.dimension_semantics<parallel>], iteration_bounds = array<i64: 1>, scalar_prefetch = 0 : i64, scratch_operands = 0 : i64, tpu.core_type = #tpu.core_type<tc>, window_params = [{transform_indices = @transform_0, window_bounds = array<i64: 8, 64>}, {pipeline_mode = #tpu.pipeline_mode<synchronous>, transform_indices = @transform_1, window_bounds = array<i64: 64, 512>}, {pipeline_mode = #tpu.pipeline_mode<synchronous>, transform_indices = @transform_2, window_bounds = array<i64: 1, 512>}, {pipeline_mode = #tpu.pipeline_mode<synchronous>, transform_indices = @transform_3, window_bounds = array<i64: 512, 128>}, {pipeline_mode = #tpu.pipeline_mode<synchronous>, transform_indices = @transform_4, window_bounds = array<i64: 1, 128>}, {pipeline_mode = #tpu.pipeline_mode<synchronous>, transform_indices = @transform_5, window_bounds = array<i64: 128, 8>}, {pipeline_mode = #tpu.pipeline_mode<synchronous>, transform_indices = @transform_6, window_bounds = array<i64: 1, 8>}, {transform_indices = @transform_7, window_bounds = array<i64: 8, 8>}]} {
    %c0 = arith.constant 0 : index
    %c0_0 = arith.constant 0 : index
    %0 = vector.load %arg1[%c0, %c0_0] : memref<8x64xf32, #tpu.memory_space<vmem>>, vector<8x64xf32>
    %1 = arith.truncf %0 : vector<8x64xf32> to vector<8x64xbf16>
    %c0_1 = arith.constant 0 : index
    %c0_2 = arith.constant 0 : index
    %2 = vector.load %arg2[%c0_1, %c0_2] : memref<64x512xbf16, #tpu.memory_space<vmem>>, vector<64x512xbf16>
    %cst = arith.constant dense<0.000000e+00> : vector<8x512xf32>
    %3 = tpu.matmul %1, %2, %cst {dimension_numbers = #tpu.dot_dimension_numbers<[1], [0], [0], [1], [0, 0, 1, 1], [], []>} : vector<8x64xbf16>, vector<64x512xbf16>, vector<8x512xf32> -> vector<8x512xf32>
    %c0_3 = arith.constant 0 : index
    %c0_4 = arith.constant 0 : index
    %4 = vector.load %arg3[%c0_3, %c0_4] : memref<1x512xf32, #tpu.memory_space<vmem>>, vector<1x512xf32>
    %5 = vector.broadcast %4 : vector<1x512xf32> to vector<8x512xf32>
    %6 = arith.addf %3, %5 : vector<8x512xf32>
    %cst_5 = arith.constant 0.000000e+00 : f32
    %7 = vector.broadcast %cst_5 : f32 to vector<8x512xf32>
    %8 = arith.maximumf %6, %7 : vector<8x512xf32>
    %9 = arith.truncf %8 : vector<8x512xf32> to vector<8x512xbf16>
    %c0_6 = arith.constant 0 : index
    %c0_7 = arith.constant 0 : index
    %10 = vector.load %arg4[%c0_6, %c0_7] : memref<512x128xbf16, #tpu.memory_space<vmem>>, vector<512x128xbf16>
    %cst_8 = arith.constant dense<0.000000e+00> : vector<8x128xf32>
    %11 = tpu.matmul %9, %10, %cst_8 {dimension_numbers = #tpu.dot_dimension_numbers<[1], [0], [0], [1], [0, 0, 1, 1], [], []>} : vector<8x512xbf16>, vector<512x128xbf16>, vector<8x128xf32> -> vector<8x128xf32>
    %c0_9 = arith.constant 0 : index
    %c0_10 = arith.constant 0 : index
    %12 = vector.load %arg5[%c0_9, %c0_10] : memref<1x128xf32, #tpu.memory_space<vmem>>, vector<1x128xf32>
    %13 = vector.broadcast %12 : vector<1x128xf32> to vector<8x128xf32>
    %14 = arith.addf %11, %13 : vector<8x128xf32>
    %cst_11 = arith.constant 0.000000e+00 : f32
    %15 = vector.broadcast %cst_11 : f32 to vector<8x128xf32>
    %16 = arith.maximumf %14, %15 : vector<8x128xf32>
    %17 = arith.truncf %16 : vector<8x128xf32> to vector<8x128xbf16>
    %c0_12 = arith.constant 0 : index
    %c0_13 = arith.constant 0 : index
    %18 = vector.load %arg6[%c0_12, %c0_13] : memref<128x8xbf16, #tpu.memory_space<vmem>>, vector<128x8xbf16>
    %cst_14 = arith.constant dense<0.000000e+00> : vector<8x8xf32>
    %19 = tpu.matmul %17, %18, %cst_14 {dimension_numbers = #tpu.dot_dimension_numbers<[1], [0], [0], [1], [0, 0, 1, 1], [], []>} : vector<8x128xbf16>, vector<128x8xbf16>, vector<8x8xf32> -> vector<8x8xf32>
    %c0_15 = arith.constant 0 : index
    %c0_16 = arith.constant 0 : index
    %20 = vector.load %arg7[%c0_15, %c0_16] : memref<1x8xf32, #tpu.memory_space<vmem>>, vector<1x8xf32>
    %21 = vector.broadcast %20 : vector<1x8xf32> to vector<8x8xf32>
    %22 = arith.addf %19, %21 : vector<8x8xf32>
    %c0_17 = arith.constant 0 : index
    %c0_18 = arith.constant 0 : index
    %23 = vector.load %arg8[%c0_17, %c0_18] : memref<8x8xf32, #tpu.memory_space<vmem>>, vector<8x8xf32>
    tpu.vector_store %arg8[%c0_17, %c0_18], %22 {strides = array<i32>} : memref<8x8xf32, #tpu.memory_space<vmem>>, vector<8x8xf32>,
    return
  }
  func.func @transform_0(%arg0: i32) -> (i32, i32) {
    %c0_i32 = arith.constant 0 : i32
    %c0_i32_0 = arith.constant 0 : i32
    return %arg0, %c0_i32 : i32, i32
  }
  func.func @transform_1(%arg0: i32) -> (i32, i32) {
    %c0_i32 = arith.constant 0 : i32
    %c0_i32_0 = arith.constant 0 : i32
    %c0_i32_1 = arith.constant 0 : i32
    return %c0_i32, %c0_i32_0 : i32, i32
  }
  func.func @transform_2(%arg0: i32) -> (i32, i32) {
    %c0_i32 = arith.constant 0 : i32
    %c0_i32_0 = arith.constant 0 : i32
    %c0_i32_1 = arith.constant 0 : i32
    return %c0_i32, %c0_i32_0 : i32, i32
  }
  func.func @transform_3(%arg0: i32) -> (i32, i32) {
    %c0_i32 = arith.constant 0 : i32
    %c0_i32_0 = arith.constant 0 : i32
    %c0_i32_1 = arith.constant 0 : i32
    return %c0_i32, %c0_i32_0 : i32, i32
  }
  func.func @transform_4(%arg0: i32) -> (i32, i32) {
    %c0_i32 = arith.constant 0 : i32
    %c0_i32_0 = arith.constant 0 : i32
    %c0_i32_1 = arith.constant 0 : i32
    return %c0_i32, %c0_i32_0 : i32, i32
  }
  func.func @transform_5(%arg0: i32) -> (i32, i32) {
    %c0_i32 = arith.constant 0 : i32
    %c0_i32_0 = arith.constant 0 : i32
    %c0_i32_1 = arith.constant 0 : i32
    return %c0_i32, %c0_i32_0 : i32, i32
  }
  func.func @transform_6(%arg0: i32) -> (i32, i32) {
    %c0_i32 = arith.constant 0 : i32
    %c0_i32_0 = arith.constant 0 : i32
    %c0_i32_1 = arith.constant 0 : i32
    return %c0_i32, %c0_i32_0 : i32, i32
  }
  func.func @transform_7(%arg0: i32) -> (i32, i32) {
    %c0_i32 = arith.constant 0 : i32
    %c0_i32_0 = arith.constant 0 : i32
    return %arg0, %c0_i32 : i32, i32
  }
}

</mosaic_0001>

<bundles_post_ra>
// kernel: mlp_forward.1
= control target key start
LH: loop header
LB: loop body
LE: loop exit
PB: predicated region body
PF: predicated region fallthrough
CT: control target
= control target key end

     0   :  { %12 = vsyncpa [#allocation3], 0  ;;  %s1073_s0 = inlined_call_operand.vmem [shape: f32[8,64], index: 0, kind: input, shape index: {}]   ;;  %s1074_s1 = inlined_call_operand.hbm [shape: bf16[64,512], index: 1, kind: input, shape index: {}]   ;;  %s1075_s2 = inlined_call_operand.vmem [shape: f32[1,512], index: 2, kind: input, shape index: {}]   ;;  %s1076_s3 = inlined_call_operand.hbm [shape: bf16[512,128], index: 3, kind: input, shape index: {}]   ;;  %s1077_s4 = inlined_call_operand.vmem [shape: f32[1,128], index: 4, kind: input, shape index: {}]   ;;  %s1078_s5 = inlined_call_operand.vmem [shape: bf16[128,8], index: 5, kind: input, shape index: {}]   ;;  %s1079_s6 = inlined_call_operand.vmem [shape: f32[1,8], index: 6, kind: input, shape index: {}]   ;;  %s1080_s7 = inlined_call_operand.vmem [shape: f32[8,8], index: 7, kind: output, shape index: {}]  }
   0x1   :  { %s20_s26 = sshll.u32 %s1074_s1, 4  ;;  %s21_s26 = int_to_ptr.hbm [resolvable:$true] %s20_s26 }
   0x2   :  { %13 = vsyncpa [#allocation5], 0  ;;  %s978_s27 = smov [#allocation2]   ;;  %s35_s8 = sshll.u32 %s1076_s3, 4  ;;  %s36_s8 = int_to_ptr.hbm [resolvable:$true] %s35_s8 }
   0x3   :  { %s22_s28 = sshll.u32 %s978_s27, 4  ;;  %s979_s9 = smov 256   ;;  %s23_s28 = int_to_ptr.vmem [resolvable:$true] %s22_s28 }
   0x4   :  { %s980_s10 = smov 16   ;;  %s981_s11 = smov [#allocation4]  }
   0x5   :  { %28 = dma.hbm_to_vmem [thread:$0]  %s21_s26, 2048, %s23_s28, [#allocation3], %s979_s9, %s979_s9, %s980_s10  }
   0x6   :  { %s37_s12 = sshll.u32 %s981_s11, 4  ;;  %s982_s13 = smov 64   ;;  %s38_s12 = int_to_ptr.vmem [resolvable:$true] %s37_s12 }
   0x7   :  { %s983_s14 = smov 4  }
   0x8   :  { %43 = dma.hbm_to_vmem [thread:$0]  %s36_s8, 4096, %s38_s12, [#allocation5], %s982_s13, %s982_s13, %s983_s14  }
   0x9   :  { %974 = dma.done.wait [#allocation3], 2048  }
   0xa   :  { %975 = vsyncadd [#allocation3], 4294965248 }
   0xb   :  { %976 = dma.done.wait [#allocation5], 4096  }
   0xc   :  { %977 = vsyncadd [#allocation5], 4294963200  ;;  %v684_v0 = vld [vmem:[#allocation2 + $0x60] sm:$0xf]  ;;  %v876_v1 = vld [vmem:[#allocation2 + $0x6c] sm:$0xf0] }
   0xd   :  { %v692_v2 = vld [vmem:[#allocation2 + $0x68] sm:$0xf]  ;;  %v685_v3 = vor.u32 %v876_v1, %v684_v0  ;;  %v877_v4 = vld [vmem:[#allocation2 + $0x74] sm:$0xf0]  ;;  %v875_v5 = vld [vmem:[#allocation2 + $0x6c] sm:$0xf] }
   0xe   :  { %v694_v6 = vld [vmem:[#allocation2 + $0x78] sm:$0xf0]  ;;  %v693_v7 = vor.u32 %v877_v4, %v692_v2  ;;  %v668_v9 = vld [vmem:[#allocation2 + $0x40] sm:$0xf]  ;;  %v872_v10 = vld [vmem:[#allocation2 + $0x4c] sm:$0xf0] }
   0xf   :  { %v697_v8 = vor.u32 %v875_v5, %v694_v6  ;;  %v676_v11 = vld [vmem:[#allocation2 + $0x48] sm:$0xf]  ;;  %175 = vmatpush.bf16.msra.mxu1 %v685_v3  ;;  %v669_v12 = vor.u32 %v872_v10, %v668_v9  ;;  %v873_v13 = vld [vmem:[#allocation2 + $0x54] sm:$0xf0]  ;;  %v871_v14 = vld [vmem:[#allocation2 + $0x4c] sm:$0xf] }
  0x10   :  { %v678_v15 = vld [vmem:[#allocation2 + $0x58] sm:$0xf0]  ;;  %201 = vmatpush.bf16.msra.mxu2 %v693_v7  ;;  %v677_v16 = vor.u32 %v873_v13, %v676_v11  ;;  %v652_v18 = vld [vmem:[#allocation2 + $0x20] sm:$0xf]  ;;  %v868_v19 = vld [vmem:[#allocation2 + $0x2c] sm:$0xf0] }
  0x11   :  { %214 = vmatpush.bf16.msra.mxu3 %v697_v8  ;;  %v681_v17 = vor.u32 %v871_v14, %v678_v15  ;;  %v660_v20 = vld [vmem:[#allocation2 + $0x28] sm:$0xf]  ;;  %v869_v21 = vld [vmem:[#allocation2 + $0x34] sm:$0xf0]  ;;  %v867_v22 = vld [vmem:[#allocation2 + $0x2c] sm:$0xf]  ;;  %v653_v24 = vor.u32 %v868_v19, %v652_v18 }
  0x12   :  { %v662_v23 = vld [vmem:[#allocation2 + $0x38] sm:$0xf0]  ;;  %v661_v25 = vor.u32 %v869_v21, %v660_v20  ;;  %v636_v27 = vld [vmem:[#allocation2] sm:$0xf]  ;;  %v864_v28 = vld [vmem:[#allocation2 + $0xc] sm:$0xf0] }
  0x13   :  { %176 = vmatpush.bf16.msra.mxu1 %v669_v12  ;;  %v665_v26 = vor.u32 %v867_v22, %v662_v23  ;;  %v644_v29 = vld [vmem:[#allocation2 + $0x8] sm:$0xf]  ;;  %v865_v30 = vld [vmem:[#allocation2 + $0x14] sm:$0xf0]  ;;  %v863_v31 = vld [vmem:[#allocation2 + $0xc] sm:$0xf]  ;;  %v637_v35 = vor.u32 %v864_v28, %v636_v27 }
  0x14   :  { %202 = vmatpush.bf16.msra.mxu2 %v677_v16  ;;  %v646_v32 = vld [vmem:[#allocation2 + $0x18] sm:$0xf0]  ;;  %v874_v33 = vld [vmem:[#allocation2 + $0x64] sm:$0xf]  ;;  %v686_v34 = vld [vmem:[#allocation2 + $0x70] sm:$0xf0]  ;;  %v645_v38 = vor.u32 %v865_v30, %v644_v29 }
  0x15   :  { %215 = vmatpush.bf16.msra.mxu3 %v681_v17  ;;  %v59_v36 = vld [vmem:[%s1073_s0] sm:$0xff]  ;;  %v885_v37 = vld [vmem:[#allocation4 + $0x38] sm:$0xff]  ;;  %v649_v39 = vor.u32 %v863_v31, %v646_v32  ;;  %v689_v40 = vor.u32 %v874_v33, %v686_v34  ;;  %v884_v41 = vld [vmem:[#allocation4 + $0x30] sm:$0xff]  ;;  %vm167_vm0 = vcmask 523264   ;;  %vm626_vm1 = vcmask 64512  }
  0x16   :  { %491 = vmatpush.bf16.msra.mxu0 %v885_v37  ;;  %v60_v42 = vpack.c.bf16 %v59_v36, %v59_v36  ;;  %v870_v43 = vld [vmem:[#allocation2 + $0x44] sm:$0xf]  ;;  %v670_v44 = vld [vmem:[#allocation2 + $0x50] sm:$0xf0]  ;;  %v901_v45 = vld [vmem:[#allocation4 + $0xb8] sm:$0xff] }
  0x17   :  { %177 = vmatpush.bf16.msra.mxu1 %v653_v24  ;;  %v909_v46 = vld [vmem:[#allocation4 + $0xf8] sm:$0xff]  ;;  %v673_v47 = vor.u32 %v870_v43, %v670_v44  ;;  %v883_v48 = vld [vmem:[#allocation4 + $0x28] sm:$0xff]  ;;  %v866_v49 = vld [vmem:[#allocation2 + $0x24] sm:$0xf] }
  0x18   :  { %203 = vmatpush.bf16.msra.mxu2 %v661_v25  ;;  %v654_v50 = vld [vmem:[#allocation2 + $0x30] sm:$0xf0]  ;;  %v882_v54 = vld [vmem:[#allocation4 + $0x20] sm:$0xff]  ;;  %v899_v57 = vld [vmem:[#allocation4 + $0xa8] sm:$0xff] }
  0x19   :  { %216 = vmatpush.bf16.msra.mxu3 %v665_v26  ;;  %v900_v51 = vld [vmem:[#allocation4 + $0xb0] sm:$0xff]  ;;  %v657_v53 = vor.u32 %v866_v49, %v654_v50  ;;  %v862_v55 = vld [vmem:[#allocation2 + $0x4] sm:$0xf]  ;;  %v907_v58 = vld [vmem:[#allocation4 + $0xe8] sm:$0xff] }
  0x1a   :  { %492 = vmatpush.bf16.msra.mxu0 %v884_v41  ;;  %v908_v52 = vld [vmem:[#allocation4 + $0xf0] sm:$0xff]  ;;  %v881_v60 = vld [vmem:[#allocation4 + $0x18] sm:$0xff]  ;;  %v898_v62 = vld [vmem:[#allocation4 + $0xa0] sm:$0xff] }
  0x1b   :  { %178 = vmatpush.bf16.msra.mxu1 %v637_v35  ;;  %v638_v56 = vld [vmem:[#allocation2 + $0x10] sm:$0xf0]  ;;  %v893_v61 = vld [vmem:[#allocation4 + $0x78] sm:$0xff]  ;;  %v906_v63 = vld [vmem:[#allocation4 + $0xe0] sm:$0xff] }
  0x1c   :  { %204 = vmatpush.bf16.msra.mxu2 %v645_v38  ;;  %v641_v59 = vor.u32 %v862_v55, %v638_v56  ;;  %v880_v0 = vld [vmem:[#allocation4 + $0x10] sm:$0xff]  ;;  %v897_v1 = vld [vmem:[#allocation4 + $0x98] sm:$0xff]  ;;  %v879_v4 = vld [vmem:[#allocation4 + $0x8] sm:$0xff] }
  0x1d   :  { %217 = vmatpush.bf16.msra.mxu3 %v649_v39  ;;  %v892_v2 = vld [vmem:[#allocation4 + $0x70] sm:$0xff]  ;;  %v905_v3 = vld [vmem:[#allocation4 + $0xd8] sm:$0xff]  ;;  %v891_v5 = vld [vmem:[#allocation4 + $0x68] sm:$0xff] }
  0x1e   :  { %698 = vmatmul.msk.bf16.vlgmr.msra.gmra.mxu1 %vm167_vm0, %v60_v42  ;;  %493 = vmatpush.bf16.msra.mxu0 %v883_v48  ;;  %v896_v6 = vld [vmem:[#allocation4 + $0x90] sm:$0xff]  ;;  %v878_v8 = vld [vmem:[#allocation4] sm:$0xff]  ;;  %v895_v10 = vld [vmem:[#allocation4 + $0x88] sm:$0xff] }
  0x1f   :  { %188 = vmatpush.bf16.msrb.mxu1 %v689_v40  ;;  %700 = vmatmul.msk.bf16.vlgmr.msra.gmra.mxu2 %vm167_vm0, %v60_v42  ;;  %v904_v7 = vld [vmem:[#allocation4 + $0xd0] sm:$0xff]  ;;  %v890_v9 = vld [vmem:[#allocation4 + $0x60] sm:$0xff]  ;;  %v903_v11 = vld [vmem:[#allocation4 + $0xc8] sm:$0xff] }
  0x20   :  { %517 = vmatpush.bf16.msrb.mxu2 %v901_v45  ;;  %701 = vmatmul.msk.bf16.vlgmr.msra.gmra.mxu3 %vm167_vm0, %v60_v42  ;;  %v889_v12 = vld [vmem:[#allocation4 + $0x58] sm:$0xff]  ;;  %v894_v13 = vld [vmem:[#allocation4 + $0x80] sm:$0xff]  ;;  %v888_v15 = vld [vmem:[#allocation4 + $0x50] sm:$0xff] }
  0x21   :  { %530 = vmatpush.bf16.msrb.mxu3 %v909_v46  ;;  %v902_v14 = vld [vmem:[#allocation4 + $0xc0] sm:$0xff]  ;;  %v887_v16 = vld [vmem:[#allocation4 + $0x48] sm:$0xff]  ;;  %v917_v18 = vld [vmem:[%s1078_s5 + $0x38] sm:$0xff] }
  0x22   :  { %494 = vmatpush.bf16.msra.mxu0 %v882_v54  ;;  %v886_v17 = vld [vmem:[#allocation4 + $0x40] sm:$0xff]  ;;  %v916_v44 = vld [vmem:[%s1078_s5 + $0x30] sm:$0xff]  ;;  %v915_v45 = vld [vmem:[%s1078_s5 + $0x28] sm:$0xff] }
  0x23   :  { %189 = vmatpush.bf16.msrb.mxu1 %v673_v47  ;;  %v77_v19 = vld [vmem:[%s1075_s2] sm:$0xf]  ;;  %v913_v47 = vld [vmem:[%s1078_s5 + $0x18] sm:$0xff]  ;;  %v912_v48 = vld [vmem:[%s1078_s5 + $0x10] sm:$0xff] }
  0x24   :  { %518 = vmatpush.bf16.msrb.mxu2 %v900_v51  ;;  %v79_v20 = vperm.slane %v77_v19, 0  ;;  %v81_v24 = vperm.slane %v77_v19, 2  ;;  %v82_v25 = vperm.slane %v77_v19, 3  ;;  %v80_v36 = vperm.slane %v77_v19, 1  ;;  %v914_v46 = vld [vmem:[%s1078_s5 + $0x20] sm:$0xff]  ;;  %v911_v49 = vld [vmem:[%s1078_s5 + $0x8] sm:$0xff] }
  0x25   :  { %531 = vmatpush.bf16.msrb.mxu3 %v908_v52  ;;  %v910_v50 = vld [vmem:[%s1078_s5] sm:$0xff] }
  0x26   :  { %495 = vmatpush.bf16.msra.mxu0 %v881_v60 }
  0x27   :  { %190 = vmatpush.bf16.msrb.mxu1 %v657_v53  ;;  %v924_v53 = vld [vmem:[%s1077_s4] ss:$0 sm:$0xff] }
  0x28   :  { %519 = vmatpush.bf16.msrb.mxu2 %v899_v57 }
  0x29   :  { %532 = vmatpush.bf16.msrb.mxu3 %v907_v58 }
  0x2a   :  { %496 = vmatpush.bf16.msra.mxu0 %v880_v0 }
  0x2b   :  { %191 = vmatpush.bf16.msrb.mxu1 %v641_v59 }
  0x2c   :  { %520 = vmatpush.bf16.msrb.mxu2 %v898_v62 }
  0x2d   :  { %533 = vmatpush.bf16.msrb.mxu3 %v906_v63 }
  0x2e   :  { %699 = vmatmul.msk.bf16.vlgmr.msrb.gmra.mxu1 %vm167_vm0, %v60_v42  ;;  %497 = vmatpush.bf16.msra.mxu0 %v879_v4 }
  0x2f   :  { %504 = vmatpush.bf16.msra.mxu1 %v893_v61 }
  0x30   :  { %521 = vmatpush.bf16.msrb.mxu2 %v897_v1 }
  0x31   :  { %534 = vmatpush.bf16.msrb.mxu3 %v905_v3 }
  0x32   :  { %498 = vmatpush.bf16.msra.mxu0 %v878_v8 }
  0x33   :  { %505 = vmatpush.bf16.msra.mxu1 %v892_v2  ;;  %v925_v2 = vld [vmem:[%s1079_s6] ss:$0 sm:$0xff] }
  0x34   :  { %522 = vmatpush.bf16.msrb.mxu2 %v896_v6 }
  0x35   :  { %535 = vmatpush.bf16.msrb.mxu3 %v904_v7 }
  0x36   :  { %613 = vmatpush.bf16.msrb.mxu0 %v917_v18 }
  0x37   :  { %506 = vmatpush.bf16.msra.mxu1 %v891_v5 }
  0x38   :  { %523 = vmatpush.bf16.msrb.mxu2 %v895_v10 }
  0x39   :  { %536 = vmatpush.bf16.msrb.mxu3 %v903_v11 }
  0x3a   :  { %614 = vmatpush.bf16.msrb.mxu0 %v916_v44 }
  0x3b   :  { %507 = vmatpush.bf16.msra.mxu1 %v890_v9 }
  0x3c   :  { %524 = vmatpush.bf16.msrb.mxu2 %v894_v13 }
  0x3d   :  { %537 = vmatpush.bf16.msrb.mxu3 %v902_v14 }
  0x3e   :  { %615 = vmatpush.bf16.msrb.mxu0 %v915_v45 }
  0x3f   :  { %508 = vmatpush.bf16.msra.mxu1 %v889_v12 }
  0x42   :  { %616 = vmatpush.bf16.msrb.mxu0 %v914_v46 }
  0x43   :  { %509 = vmatpush.bf16.msra.mxu1 %v888_v15 }
  0x46   :  { %617 = vmatpush.bf16.msrb.mxu0 %v913_v47 }
  0x47   :  { %510 = vmatpush.bf16.msra.mxu1 %v887_v16 }
  0x4a   :  { %618 = vmatpush.bf16.msrb.mxu0 %v912_v48 }
  0x4b   :  { %511 = vmatpush.bf16.msra.mxu1 %v886_v17 }
  0x4e   :  { %619 = vmatpush.bf16.msrb.mxu0 %v911_v49 }
  0x52   :  { %620 = vmatpush.bf16.msrb.mxu0 %v910_v50 }
  0x9b   :  { %v180_v21 = vpop.f32.mrf.mxu1 }
  0x9c   :  { %v181_v22 = vadd.f32 %v180_v21, %v79_v20 }
  0x9e   :  { %v223_v23 = vmax.f32 %v181_v22, 0.0 }
  0xa0   :  { %v227_v26 = vpack.c.bf16 %v223_v23, %v223_v23 }
  0xa2   :  { %v206_v27 = vpop.f32.mrf.mxu2  ;;  %499 = vmatmul.bf16.vlgmr.msra.gmra.mxu0 %v227_v26 }
  0xa3   :  { %v219_v28 = vpop.f32.mrf.mxu3  ;;  %v207_v29 = vadd.f32 %v206_v27, %v81_v24  ;;  %v182_v31 = vpop.f32.mrf.mxu1 }
  0xa4   :  { %v220_v30 = vadd.f32 %v219_v28, %v82_v25 }
  0xa5   :  { %v225_v32 = vmax.f32 %v207_v29, 0.0 }
  0xa6   :  { %v226_v33 = vmax.f32 %v220_v30, 0.0 }
  0xa7   :  { %v229_v34 = vpack.c.bf16 %v225_v32, %v225_v32 }
  0xa8   :  { %v230_v35 = vpack.c.bf16 %v226_v33, %v226_v33 }
  0xa9   :  { %525 = vmatmul.bf16.vlgmr.msrb.gmra.mxu2 %v229_v34 }
  0xaa   :  { %538 = vmatmul.bf16.vlgmr.msrb.gmra.mxu3 %v230_v35  ;;  %v208_v37 = vpop.f32.mrf.mxu2 }
  0xab   :  { %v221_v38 = vpop.f32.mrf.mxu3  ;;  %v193_v39 = vpop.f32.mrf.mxu1 }
  0xac   :  { %v194_v40 = vadd.f32 %v193_v39, %v80_v36 }
  0xae   :  { %v224_v41 = vmax.f32 %v194_v40, 0.0 }
  0xb0   :  { %v228_v42 = vpack.c.bf16 %v224_v41, %v224_v41 }
  0xb2   :  { %512 = vmatmul.bf16.vlgmr.msra.gmra.mxu1 %v228_v42 }
  0xb3   :  { %v195_v43 = vpop.f32.mrf.mxu1 }
 0x11f   :  { %v500_v51 = vpop.f32.mrf.mxu0 }
 0x120   :  { %v501_v56 = vadd.f32 %v924_v53, %v500_v51 }
 0x127   :  { %v502_v52 = vpop.f32.mrf.mxu0 }
 0x12c   :  { %v526_v54 = vpop.f32.mrf.mxu2 }
 0x12d   :  { %v539_v55 = vpop.f32.mrf.mxu3 }
 0x12f   :  { %v513_v57 = vpop.f32.mrf.mxu1 }
 0x130   :  { %v514_v58 = vadd.f32 %v513_v57, %v501_v56 }
 0x132   :  { %v527_v59 = vadd.f32 %v526_v54, %v514_v58 }
 0x134   :  { %v540_v60 = vadd.f32 %v539_v55, %v527_v59  ;;  %v528_v61 = vpop.f32.mrf.mxu2 }
 0x135   :  { %v541_v62 = vpop.f32.mrf.mxu3 }
 0x136   :  { %v543_v63 = vmax.f32 %v540_v60, 0.0 }
 0x137   :  { %v515_v0 = vpop.f32.mrf.mxu1 }
 0x138   :  { %v544_v1 = vpack.c.bf16 %v543_v63, %v543_v63 }
 0x13a   :  { %621 = vmatmul.bf16.vlgmr.msrb.gmra.mxu0 %v544_v1 }
 0x1b7   :  { %v622_v3 = vpop.f32.mrf.mxu0 }
 0x1b8   :  { %v623_v4 = vadd.f32 %v925_v2, %v622_v3 }
 0x1ba   :  { %627 = vst.msk [vmem:[%s1080_s7] sm:$0xff] %vm626_vm1, %v623_v4 }
 0x1bf   :  { %v624_v5 = vpop.f32.mrf.mxu0 }
 0x1c0   :  { %632 = vsyncpa [#allocation3], 1 }
 0x1c1   :  { %633 = vsyncpa [#allocation5], 1 }

</bundles_post_ra>
